<compile_context>
chip_gen: v5e
topology: v5e:2x2
jax: 0.10.0
libtpu: 0.0.40
codegen_flags: <defaults>
</compile_context>

<pallas_src>
import functools
import math

import jax
import jax.numpy as jnp
from jax import lax
from jax.experimental import pallas as pl
from jax.experimental.pallas import tpu as pltpu


def _round_up(v, m):
    return (v + m - 1) // m * m


def _predictor_kernel(x_ref, wcls_t_ref, wbbox_t_ref, bboxb_ref,
                      scores_ref, bbox_ref):
    """One N-tile of the FPNCosinePredictor forward.

    x_ref:      (TN, C)        streamed input tile (input dtype)
    wcls_t_ref: (C,  NCp)      resident, already scale_cls * W_cls / ||W_cls||,
                               pre-transposed + cast to matmul dtype
    wbbox_t_ref:(C,  Dp)       resident, pre-transposed + cast to matmul dtype
    bboxb_ref:  (1,  Dp)       resident bbox bias (f32)
    scores_ref: (TN, NCp)      output tile
    bbox_ref:   (TN, Dp)       output tile
    """
    f32 = jnp.float32
    # max(||v||, eps) == sqrt(max(||v||^2, eps^2)) with eps = 1e-12.
    eps2 = f32(1e-24)
    mm_dtype = wcls_t_ref.dtype

    x = x_ref[...]                       # (TN, C), input dtype
    xf = x.astype(f32)                   # f32 for relu / norm (no-op if f32 in)

    # ---- bbox branch: Linear(relu(x)) --------------------------------------
    relu_x = jnp.maximum(xf, 0.0)
    bbox = jnp.dot(relu_x.astype(mm_dtype), wbbox_t_ref[...],
                   preferred_element_type=f32)                     # (TN, Dp)
    bbox_ref[...] = (bbox + bboxb_ref[...]).astype(bbox_ref.dtype)

    # ---- cosine-similarity classification branch ---------------------------
    #   scale * normalize(x) @ normalize(W)^T
    #     == (x @ (scale * W / ||W||)^T) * rsqrt(||x||^2)
    # Weight normalization + scale are pre-folded into wcls_t (grid-invariant);
    # only the per-row x-norm rescale of the small score tile remains here.
    raw = jnp.dot(x.astype(mm_dtype), wcls_t_ref[...],
                  preferred_element_type=f32)                      # (TN, NCp)
    inv_xn = lax.rsqrt(jnp.maximum(
        jnp.sum(xf * xf, axis=-1, keepdims=True), eps2))           # (TN, 1) EUP
    scores_ref[...] = (raw * inv_xn).astype(scores_ref.dtype)


def fpn_cosine_predictor(x, cls_weight, bbox_weight, bbox_bias, scale_cls,
                         *, tile_n=512, matmul_dtype=jnp.float32):
    """JAX wrapper around the Pallas kernel.

    x:            (N, C) or (N, C, 1, 1)
    cls_weight:   (num_classes, C)
    bbox_weight:  (num_bbox_reg_classes*4, C)
    bbox_bias:    (num_bbox_reg_classes*4,)
    scale_cls:    python float / 0-d float (learnable parameter at runtime)
    matmul_dtype: jnp.float32 (exact) or jnp.bfloat16 (faster MXU on v6e/v7x,
                  halves resident-weight VMEM; accumulation stays f32).
    Returns (scores, bbox_deltas), both float32.
    """
    f32 = jnp.float32
    if x.ndim == 4:
        assert x.shape[2] == 1 and x.shape[3] == 1
        x = x.reshape(x.shape[0], -1)

    n, c = x.shape
    num_classes, c_w = cls_weight.shape
    assert c_w == c
    dbox = bbox_weight.shape[0]

    # ---- Hoisted, grid-invariant weight preparation (plain XLA, once) ------
    cw = cls_weight.astype(f32)
    inv_wn = 1.0 / jnp.maximum(
        jnp.sqrt(jnp.sum(cw * cw, axis=-1, keepdims=True)), f32(1e-12))
    scale = jnp.asarray(scale_cls, f32).reshape(())
    w_hat = cw * (scale * inv_wn)                        # (NC, C), f32
    w_hat_t = w_hat.T.astype(matmul_dtype)               # (C, NC)
    w_bbox_t = bbox_weight.T.astype(matmul_dtype)        # (C, D)
    bboxb = bbox_bias.astype(f32).reshape(1, dbox)       # (1, D)

    # ---- Padding ------------------------------------------------------------
    # Output lane dims padded to multiples of 128 (unmasked lane-dense stores);
    # the contraction dim C is left unpadded (full-dim blocks are legal).
    nc_pad = _round_up(num_classes, 128)
    d_pad = _round_up(dbox, 128)

    # Adaptive N tiling: balance tiles so the zero-row tail is < 8 rows/tile.
    tn_cap = max(8, min(int(tile_n), _round_up(n, 8)))
    n_tiles = max(1, math.ceil(n / tn_cap))
    tn = _round_up(math.ceil(n / n_tiles), 8)
    n_pad = tn * n_tiles

    def pad2(a, rows, cols):
        r, cc = a.shape
        if (r, cc) == (rows, cols):
            return a
        return jnp.pad(a, ((0, rows - r), (0, cols - cc)))

    x_p = pad2(x, n_pad, c)
    wcls_p = pad2(w_hat_t, c, nc_pad)
    wbbox_p = pad2(w_bbox_t, c, d_pad)
    bboxb_p = pad2(bboxb, 1, d_pad)

    grid = (n_tiles,)

    scores_p, bbox_p = pl.pallas_call(
        _predictor_kernel,
        out_shape=(
            jax.ShapeDtypeStruct((n_pad, nc_pad), jnp.float32),
            jax.ShapeDtypeStruct((n_pad, d_pad), jnp.float32),
        ),
        grid_spec=pltpu.PrefetchScalarGridSpec(
            num_scalar_prefetch=0,
            grid=grid,
            in_specs=[
                pl.BlockSpec((tn, c), lambda i: (i, 0)),        # x tile (streamed)
                pl.BlockSpec((c, nc_pad), lambda i: (0, 0)),    # cls W^T (resident)
                pl.BlockSpec((c, d_pad), lambda i: (0, 0)),     # bbox W^T (resident)
                pl.BlockSpec((1, d_pad), lambda i: (0, 0)),     # bbox bias (resident)
            ],
            out_specs=(
                pl.BlockSpec((tn, nc_pad), lambda i: (i, 0)),   # scores tile
                pl.BlockSpec((tn, d_pad), lambda i: (i, 0)),    # bbox tile
            ),
        ),
        compiler_params=pltpu.CompilerParams(
            dimension_semantics=("parallel",),
            # Above the v5e/v6e scoped defaults, safely under v7x's 64 MiB
            # physical VMEM per TensorCore. For very large num_classes * C,
            # switch matmul_dtype to bfloat16 before shrinking tile_n.
            vmem_limit_bytes=48 * 1024 * 1024,
        ),
    )(x_p, wcls_p, wbbox_p, bboxb_p)

    return scores_p[:n, :num_classes], bbox_p[:n, :dbox]


if __name__ == "__main__":
    # Small, module-consistent shapes.
    N = 8                     # number of RoIs
    C = 32                    # representation_size == in_channels
    NUM_CLASSES = 16          # cfg.MODEL.ROI_BOX_HEAD.NUM_CLASSES
    CLS_AGNOSTIC = False
    NUM_BBOX_REG_CLASSES = 2 if CLS_AGNOSTIC else NUM_CLASSES
    DBOX = NUM_BBOX_REG_CLASSES * 4
    SCALE_CLS = 20.0          # cfg.MODEL.FEW_SHOT.ScaleCls

    key = jax.random.PRNGKey(0)
    k_x, k_cls, k_bbox = jax.random.split(key, 3)

    # Input as in the ROI head: (N, C, 1, 1)
    x = jax.random.normal(k_x, (N, C, 1, 1), dtype=jnp.float32)

    # Parameter init matching the module's __init__ (std=0.01 / 0.001, bias=0).
    cls_weight = 0.01 * jax.random.normal(k_cls, (NUM_CLASSES, C), dtype=jnp.float32)
    bbox_weight = 0.001 * jax.random.normal(k_bbox, (DBOX, C), dtype=jnp.float32)
    bbox_bias = jnp.zeros((DBOX,), dtype=jnp.float32)

    # Reference in plain JAX (same math as the PyTorch forward).
    x2 = x.reshape(N, -1)
    ref_bbox = jnp.maximum(x2, 0.0) @ bbox_weight.T + bbox_bias
    xh = x2 / jnp.maximum(jnp.linalg.norm(x2, axis=-1, keepdims=True), 1e-12)
    wh = cls_weight / jnp.maximum(
        jnp.linalg.norm(cls_weight, axis=-1, keepdims=True), 1e-12)
    ref_scores = SCALE_CLS * (xh @ wh.T)

    # Exact f32 path.
    scores, bbox_deltas = fpn_cosine_predictor(
        x, cls_weight, bbox_weight, bbox_bias, SCALE_CLS,
        matmul_dtype=jnp.float32)
    jax.block_until_ready((scores, bbox_deltas))
    assert scores.shape == (N, NUM_CLASSES)
    assert bbox_deltas.shape == (N, DBOX)
    assert jnp.allclose(scores, ref_scores, atol=1e-4, rtol=1e-5)
    assert jnp.allclose(bbox_deltas, ref_bbox, atol=1e-4, rtol=1e-5)

    # Fast bf16-MXU path (f32 accumulation / norms) -> looser tolerance.
    scores_bf, bbox_bf = fpn_cosine_predictor(
        x, cls_weight, bbox_weight, bbox_bias, SCALE_CLS,
        matmul_dtype=jnp.bfloat16)
    jax.block_until_ready((scores_bf, bbox_bf))
    assert jnp.allclose(scores_bf, ref_scores, atol=0.2, rtol=0.02)
    assert jnp.allclose(bbox_bf, ref_bbox, atol=0.02, rtol=0.02)

    # TODO(synk): the `use_distill=True` branch needs a JSON logits file and a
    # per-image gather + MSE loss; it has no in-kernel equivalent and is omitted.
    print("KERNEL_OK")
</pallas_src>

<mosaic_0001>
module attributes {stable_mosaic.version = 11 : i64} {
  func.func @_predictor_kernel(%arg0: i32, %arg1: memref<8x32xf32, #tpu.memory_space<vmem>>, %arg2: memref<32x128xf32, #tpu.memory_space<vmem>>, %arg3: memref<32x128xf32, #tpu.memory_space<vmem>>, %arg4: memref<1x128xf32, #tpu.memory_space<vmem>>, %arg5: memref<8x128xf32, #tpu.memory_space<vmem>>, %arg6: memref<8x128xf32, #tpu.memory_space<vmem>>) attributes {dimension_semantics = [#tpu.dimension_semantics<parallel>], iteration_bounds = array<i64: 1>, scalar_prefetch = 0 : i64, scratch_operands = 0 : i64, tpu.core_type = #tpu.core_type<tc>, window_params = [{transform_indices = @transform_0, window_bounds = array<i64: 8, 32>}, {pipeline_mode = #tpu.pipeline_mode<synchronous>, transform_indices = @transform_1, window_bounds = array<i64: 32, 128>}, {pipeline_mode = #tpu.pipeline_mode<synchronous>, transform_indices = @transform_2, window_bounds = array<i64: 32, 128>}, {pipeline_mode = #tpu.pipeline_mode<synchronous>, transform_indices = @transform_3, window_bounds = array<i64: 1, 128>}, {transform_indices = @transform_4, window_bounds = array<i64: 8, 128>}, {transform_indices = @transform_5, window_bounds = array<i64: 8, 128>}]} {
    %c0 = arith.constant 0 : index
    %c0_0 = arith.constant 0 : index
    %0 = vector.load %arg1[%c0, %c0_0] : memref<8x32xf32, #tpu.memory_space<vmem>>, vector<8x32xf32>
    %cst = arith.constant 0.000000e+00 : f32
    %1 = vector.broadcast %cst : f32 to vector<8x32xf32>
    %2 = arith.maximumf %0, %1 : vector<8x32xf32>
    %c0_1 = arith.constant 0 : index
    %c0_2 = arith.constant 0 : index
    %3 = vector.load %arg3[%c0_1, %c0_2] : memref<32x128xf32, #tpu.memory_space<vmem>>, vector<32x128xf32>
    %cst_3 = arith.constant dense<0.000000e+00> : vector<8x128xf32>
    %4 = tpu.matmul %2, %3, %cst_3 {dimension_numbers = #tpu.dot_dimension_numbers<[1], [0], [0], [1], [0, 0, 1, 1], [], []>} : vector<8x32xf32>, vector<32x128xf32>, vector<8x128xf32> -> vector<8x128xf32>
    %c0_4 = arith.constant 0 : index
    %c0_5 = arith.constant 0 : index
    %5 = vector.load %arg4[%c0_4, %c0_5] : memref<1x128xf32, #tpu.memory_space<vmem>>, vector<1x128xf32>
    %6 = vector.broadcast %5 : vector<1x128xf32> to vector<8x128xf32>
    %7 = arith.addf %4, %6 : vector<8x128xf32>
    %c0_6 = arith.constant 0 : index
    %c0_7 = arith.constant 0 : index
    %8 = vector.load %arg6[%c0_6, %c0_7] : memref<8x128xf32, #tpu.memory_space<vmem>>, vector<8x128xf32>
    tpu.vector_store %arg6[%c0_6, %c0_7], %7 {strides = array<i32>} : memref<8x128xf32, #tpu.memory_space<vmem>>, vector<8x128xf32>,
    %c0_8 = arith.constant 0 : index
    %c0_9 = arith.constant 0 : index
    %9 = vector.load %arg2[%c0_8, %c0_9] : memref<32x128xf32, #tpu.memory_space<vmem>>, vector<32x128xf32>
    %cst_10 = arith.constant dense<0.000000e+00> : vector<8x128xf32>
    %10 = tpu.matmul %0, %9, %cst_10 {dimension_numbers = #tpu.dot_dimension_numbers<[1], [0], [0], [1], [0, 0, 1, 1], [], []>} : vector<8x32xf32>, vector<32x128xf32>, vector<8x128xf32> -> vector<8x128xf32>
    %11 = arith.mulf %0, %0 : vector<8x32xf32>
    %cst_11 = arith.constant dense<0.000000e+00> : vector<8xf32>
    %12 = vector.multi_reduction <add>, %11, %cst_11 [1] : vector<8x32xf32> to vector<8xf32>
    %13 = vector.shape_cast %12 : vector<8xf32> to vector<8x1xf32>
    %cst_12 = arith.constant 1.000000e-24 : f32
    %14 = vector.broadcast %cst_12 : f32 to vector<8x1xf32>
    %15 = arith.maximumf %13, %14 : vector<8x1xf32>
    %16 = math.rsqrt %15 : vector<8x1xf32>
    %17 = vector.broadcast %16 : vector<8x1xf32> to vector<8x128xf32>
    %18 = arith.mulf %10, %17 : vector<8x128xf32>
    %c0_13 = arith.constant 0 : index
    %c0_14 = arith.constant 0 : index
    %19 = vector.load %arg5[%c0_13, %c0_14] : memref<8x128xf32, #tpu.memory_space<vmem>>, vector<8x128xf32>
    tpu.vector_store %arg5[%c0_13, %c0_14], %18 {strides = array<i32>} : memref<8x128xf32, #tpu.memory_space<vmem>>, vector<8x128xf32>,
    return
  }
  func.func @transform_0(%arg0: i32) -> (i32, i32) {
    %c0_i32 = arith.constant 0 : i32
    %c0_i32_0 = arith.constant 0 : i32
    return %arg0, %c0_i32 : i32, i32
  }
  func.func @transform_1(%arg0: i32) -> (i32, i32) {
    %c0_i32 = arith.constant 0 : i32
    %c0_i32_0 = arith.constant 0 : i32
    %c0_i32_1 = arith.constant 0 : i32
    return %c0_i32, %c0_i32_0 : i32, i32
  }
  func.func @transform_2(%arg0: i32) -> (i32, i32) {
    %c0_i32 = arith.constant 0 : i32
    %c0_i32_0 = arith.constant 0 : i32
    %c0_i32_1 = arith.constant 0 : i32
    return %c0_i32, %c0_i32_0 : i32, i32
  }
  func.func @transform_3(%arg0: i32) -> (i32, i32) {
    %c0_i32 = arith.constant 0 : i32
    %c0_i32_0 = arith.constant 0 : i32
    %c0_i32_1 = arith.constant 0 : i32
    return %c0_i32, %c0_i32_0 : i32, i32
  }
  func.func @transform_4(%arg0: i32) -> (i32, i32) {
    %c0_i32 = arith.constant 0 : i32
    %c0_i32_0 = arith.constant 0 : i32
    return %arg0, %c0_i32 : i32, i32
  }
  func.func @transform_5(%arg0: i32) -> (i32, i32) {
    %c0_i32 = arith.constant 0 : i32
    %c0_i32_0 = arith.constant 0 : i32
    return %arg0, %c0_i32 : i32, i32
  }
}

</mosaic_0001>

<bundles_post_ra>
// kernel: tpu_custom_call.1
= control target key start
LH: loop header
LB: loop body
LE: loop exit
PB: predicated region body
PF: predicated region fallthrough
CT: control target
= control target key end

     0   :  { %11 = vsyncpa [#allocation3], 0  ;;  %s377_s0 = inlined_call_operand.hbm [shape: f32[8,32], index: 0, kind: input, shape index: {}]   ;;  %s378_s1 = inlined_call_operand.hbm [shape: f32[32,128], index: 1, kind: input, shape index: {}]   ;;  %s379_s2 = inlined_call_operand.hbm [shape: f32[32,128], index: 2, kind: input, shape index: {}]   ;;  %s380_s3 = inlined_call_operand.vmem [shape: f32[1,128], index: 3, kind: input, shape index: {}]   ;;  %s381_s4 = inlined_call_operand.hbm [shape: f32[8,128], index: 4, kind: output, shape index: {0}]   ;;  %s382_s5 = inlined_call_operand.hbm [shape: f32[8,128], index: 5, kind: output, shape index: {1}]  }
   0x1   :  { %12 = vsyncpa [#allocation6], 0 }
   0x2   :  { %13 = vsyncpa [#allocation4], 0  ;;  %s30_s20 = sshll.u32 %s378_s1, 4  ;;  %s31_s20 = int_to_ptr.hbm [resolvable:$true] %s30_s20 }
   0x3   :  { %14 = vsyncpa [#allocation10], 0  ;;  %s319_s21 = smov [#allocation5]   ;;  %s20_s25 = sshll.u32 %s377_s0, 4  ;;  %s21_s25 = int_to_ptr.hbm [resolvable:$true] %s20_s25 }
   0x4   :  { %s32_s22 = sshll.u32 %s319_s21, 4  ;;  %s320_s26 = smov 128   ;;  %s33_s22 = int_to_ptr.vmem [resolvable:$true] %s32_s22 }
   0x5   :  { %s321_s27 = smov 8   ;;  %s322_s28 = smov [#allocation2]  }
   0x6   :  { %38 = dma.hbm_to_vmem [thread:$0]  %s31_s20, 512, %s33_s22, [#allocation6], %s320_s26, %s320_s26, %s321_s27  }
   0x7   :  { %s22_s29 = sshll.u32 %s322_s28, 4  ;;  %s43_s7 = sshll.u32 %s379_s2, 4  ;;  %s23_s29 = int_to_ptr.vmem [resolvable:$true] %s22_s29  ;;  %s44_s7 = int_to_ptr.hbm [resolvable:$true] %s43_s7 }
   0x8   :  { %25 = dma.hbm_to_vmem [thread:$0]  %s21_s25, 128, %s23_s29, [#allocation3]  }
   0x9   :  { %s323_s1 = smov [#allocation7]  }
   0xa   :  { %s45_s8 = sshll.u32 %s323_s1, 4  ;;  %s46_s8 = int_to_ptr.vmem [resolvable:$true] %s45_s8 }
   0xb   :  { %51 = dma.hbm_to_vmem [thread:$0]  %s44_s7, 512, %s46_s8, [#allocation6], %s320_s26, %s320_s26, %s321_s27  }
   0xc   :  { %311 = dma.done.wait [#allocation3], 128  }
   0xd   :  { %312 = vsyncadd [#allocation3], 4294967168 }
   0xe   :  { %313 = dma.done.wait [#allocation6], 1024  }
   0xf   :  { %314 = vsyncadd [#allocation6], 4294966272  ;;  %v66_v0 = vld [vmem:[#allocation2] sm:$0xff]  ;;  %vm76_vm0 = vcmask 261120   ;;  %v70_v4 = vld [vmem:[#allocation7 + $0x10] sm:$0xff]  ;;  %s324_s9 = smov [#allocation9]  }
  0x10   :  { %v71_v1 = vld [vmem:[#allocation7 + $0x18] sm:$0xff]  ;;  %v128_v3 = vmul.f32 %v66_v0, %v66_v0  ;;  %v103_v5 = vld [vmem:[#allocation5 + $0x10] sm:$0xff]  ;;  %v69_v6 = vld [vmem:[#allocation7 + $0x8] sm:$0xff]  ;;  %v67_v11 = vmax.f32 %v66_v0, 0.0  ;;  %s161_s10 = sshll.u32 %s324_s9, 4  ;;  %s163_s13 = sshll.u32 %s382_s5, 4  ;;  %s162_s10 = int_to_ptr.vmem [resolvable:$true] %s161_s10  ;;  %s164_s13 = int_to_ptr.hbm [resolvable:$true] %s163_s13 }
  0x11   :  { %v104_v2 = vld [vmem:[#allocation5 + $0x18] sm:$0xff]  ;;  %92 = vmatpush.msra.mxu0 %v71_v1  ;;  %v102_v7 = vld [vmem:[#allocation5 + $0x8] sm:$0xff]  ;;  %v68_v9 = vld [vmem:[#allocation7] sm:$0xff]  ;;  %s325_s14 = smov [#allocation8]  }
  0x12   :  { %120 = vmatpush.msra.mxu1 %v104_v2  ;;  %v129_v8 = vsel %vm76_vm0, %v128_v3, 0.0  ;;  %v101_v10 = vld [vmem:[#allocation5] sm:$0xff]  ;;  %v188_v16 = vld [vmem:[%s380_s3] ss:$0 sm:$0xff]  ;;  %s150_s15 = sshll.u32 %s325_s14, 4  ;;  %s152_s3 = sshll.u32 %s381_s4, 4  ;;  %s151_s15 = int_to_ptr.vmem [resolvable:$true] %s150_s15  ;;  %s153_s3 = int_to_ptr.hbm [resolvable:$true] %s152_s3 }
  0x13   :  { %93 = vmatpush.msra.mxu0 %v70_v4  ;;  %130 = vadd.xlane.f32.xlu0 %v129_v8 }
  0x14   :  { %121 = vmatpush.msra.mxu1 %v103_v5 }
  0x15   :  { %94 = vmatpush.msra.mxu0 %v69_v6 }
  0x16   :  { %122 = vmatpush.msra.mxu1 %v102_v7 }
  0x17   :  { %95 = vmatpush.msra.mxu0 %v68_v9 }
  0x18   :  { %123 = vmatpush.msra.mxu1 %v101_v10  ;;  %179 = vmatmul.msk.f32.vlgmr.msra.gmra.mxu0 %vm76_vm0, %v67_v11 }
  0x19   :  { %180 = vmatmul.msk.f32.vlgmr.msra.gmra.mxu1 %vm76_vm0, %v66_v0 }
  0x86   :  { %v131_v12 = vpop.xlane.xlu0 %130 }
  0x87   :  { %v132_v13 = vmax.f32 %v131_v12, 1e-24 }
  0x89   :  { %189 = vrsqrt.f32 %v132_v13  ;;  %vm139_vm2 = vweird.f32 %v132_v13 }
  0x8f   :  { %v190_v14 = vpop.eup %189 }
  0x90   :  { %v134_v15 = vmul.f32 %v190_v14, %v132_v13  ;;  %vm140_vm1 = vweird.f32 %v190_v14 }
  0x91   :  { %vm141_vm3 = vmor %vm139_vm2, %vm140_vm1 }
  0x92   :  { %v135_v17 = vmul.f32 %v190_v14, %v134_v15 }
  0x94   :  { %v136_v18 = vmul.f32 0.5, %v135_v17 }
  0x95   :  { %v97_v19 = vpop.f32.mrf.mxu0 }
  0x96   :  { %v98_v20 = vadd.f32 %v188_v16, %v97_v19  ;;  %v137_v21 = vsub.f32 1.5, %v136_v18  ;;  %v125_v22 = vpop.f32.mrf.mxu1 }
  0x98   :  { %100 = vst [vmem:[#allocation9] sm:$0xff] %v98_v20  ;;  %v138_v23 = vmul.f32 %v190_v14, %v137_v21 }
  0x99   :  { %166 = dma.vmem_to_hbm [thread:$0]  %s162_s10, 128, %s164_s13, [#allocation10]  }
  0x9a   :  { %v142_v24 = vsel %vm141_vm3, %v190_v14, %v138_v23 }
  0x9b   :  { %v143_v25 = vmul.f32 %v142_v24, %v125_v22 }
  0x9d   :  { %144 = vst [vmem:[#allocation8] sm:$0xff] %v143_v25 }
  0x9e   :  { %155 = dma.vmem_to_hbm [thread:$0]  %s151_s15, 128, %s153_s3, [#allocation4]  }
  0x9f   :  { %315 = dma.done.wait [#allocation4], 128  }
  0xa0   :  { %316 = vsyncadd [#allocation4], 4294967168 }
  0xa1   :  { %317 = dma.done.wait [#allocation10], 128  }
  0xa2   :  { %318 = vsyncadd [#allocation10], 4294967168 }
  0xa3   :  { %175 = vsyncpa [#allocation3], 1 }
  0xa4   :  { %176 = vsyncpa [#allocation6], 1 }
  0xa5   :  { %177 = vsyncpa [#allocation4], 1 }
  0xa6   :  { %178 = vsyncpa [#allocation10], 1 }

</bundles_post_ra>
